<compile_context>
chip_gen: v7x
topology: tpu7x:2x2x1
jax: 0.10.0
libtpu: 0.0.40
codegen_flags: <defaults>
</compile_context>

<pallas_src>
import math
import functools

import jax
import jax.numpy as jnp
from jax.experimental import pallas as pl
from jax.experimental.pallas import tpu as pltpu


_TILE_BYTES_TARGET = 2 * 1024 * 1024          # ~2 MiB x-tile per grid step
_VMEM_LIMIT = 32 * 1024 * 1024                # safe on v5e/v6e/v7x


# ----------------------------------------------------------------------------
# Kernels
# ----------------------------------------------------------------------------
def _pe_add_kernel(x_ref, pe_ref, o_ref):
    # x_ref: (TS, B, D), pe_ref: (TS, 1, D) -> broadcasts over the batch axis.
    o_ref[...] = x_ref[...] + pe_ref[...].astype(x_ref.dtype)


def _pe_add_dropout_kernel(x_ref, pe_ref, bits_ref, o_ref, *,
                           keep_threshold, inv_keep):
    # Training-mode dropout: keep with prob (1-p) via an integer threshold
    # compare on pre-generated uint32 bits; survivors scaled by 1/(1-p).
    y = x_ref[...] + pe_ref[...].astype(x_ref.dtype)
    keep = bits_ref[...] < jnp.uint32(keep_threshold)
    o_ref[...] = jnp.where(keep, y * inv_keep, 0.0).astype(o_ref.dtype)


# ----------------------------------------------------------------------------
# Module-equivalent wrapper
# ----------------------------------------------------------------------------
def make_pe_table(input_dim, max_len, dtype=jnp.float32):
    """Deterministic positional-encoding table, shape (max_len, input_dim)."""
    position = jnp.arange(0, max_len, dtype=jnp.float32)[:, None]          # (L, 1)
    div_term = jnp.exp(
        -jnp.arange(0, input_dim, 2, dtype=jnp.float32)
        * math.log(10000.0) / input_dim
    )                                                                       # (D/2,)
    pe = jnp.zeros((max_len, input_dim), dtype=jnp.float32)
    pe = pe.at[:, 0::2].set(jnp.sin(position * div_term))
    pe = pe.at[:, 1::2].set(jnp.cos(position * div_term))
    return pe.astype(dtype)


def _choose_seq_tile(S, B, D, itemsize):
    row_bytes = max(1, B * D * itemsize)
    ts = _TILE_BYTES_TARGET // row_bytes
    return max(1, min(S, ts))


def positional_encoding(x, pe, *, dropout_p=0.1, training=False, rng_key=None):
    """x: (seq, bs, input_dim); pe: (max_len, input_dim) with max_len >= seq."""
    S, B, D = x.shape
    assert pe.shape[0] >= S and pe.shape[1] == D

    # Rank-match pe to (max_len, 1, D): a metadata-only expand_dims, the
    # full table is handed to pallas_call and only rows < S are DMA'd.
    pe3 = pe[:, None, :]

    itemsize = jnp.dtype(x.dtype).itemsize
    TS = _choose_seq_tile(S, B, D, itemsize)
    grid = (pl.cdiv(S, TS),)

    x_spec = pl.BlockSpec((TS, B, D), lambda s: (s, 0, 0))
    pe_spec = pl.BlockSpec((TS, 1, D), lambda s: (s, 0, 0))
    out_spec = pl.BlockSpec((TS, B, D), lambda s: (s, 0, 0))

    compiler_params = pltpu.CompilerParams(
        dimension_semantics=("parallel",),
        vmem_limit_bytes=_VMEM_LIMIT,
    )

    if (not training) or dropout_p == 0.0:
        # Eval mode: dropout is the identity.
        cost = pl.CostEstimate(
            flops=S * B * D, transcendentals=0,
            bytes_accessed=(2 * S * B * D + S * D) * itemsize)
        return pl.pallas_call(
            _pe_add_kernel,
            out_shape=jax.ShapeDtypeStruct((S, B, D), x.dtype),
            grid_spec=pltpu.PrefetchScalarGridSpec(
                num_scalar_prefetch=0,
                grid=grid,
                in_specs=[x_spec, pe_spec],
                out_specs=out_spec,
            ),
            compiler_params=compiler_params,
            cost_estimate=cost,
        )(x, pe3)

    # Training mode.
    keep_prob = 1.0 - float(dropout_p)
    keep_threshold = min(int(round(keep_prob * (2 ** 32))), 2 ** 32 - 1)
    if rng_key is None:
        rng_key = jax.random.PRNGKey(0)
    # Random bits generated once outside the kernel (portable: no in-kernel
    # PRNG primitives, which don't lower in CPU/interpret mode).
    bits = jax.random.bits(rng_key, (S, B, D), dtype=jnp.uint32)
    bits_spec = pl.BlockSpec((TS, B, D), lambda s: (s, 0, 0))

    kernel = functools.partial(
        _pe_add_dropout_kernel,
        keep_threshold=keep_threshold,
        inv_keep=1.0 / keep_prob,
    )
    cost = pl.CostEstimate(
        flops=3 * S * B * D, transcendentals=0,
        bytes_accessed=(2 * S * B * D + S * D) * itemsize + S * B * D * 4)
    return pl.pallas_call(
        kernel,
        out_shape=jax.ShapeDtypeStruct((S, B, D), x.dtype),
        grid_spec=pltpu.PrefetchScalarGridSpec(
            num_scalar_prefetch=0,
            grid=grid,
            in_specs=[x_spec, pe_spec, bits_spec],
            out_specs=out_spec,
        ),
        compiler_params=compiler_params,
        cost_estimate=cost,
    )(x, pe3, bits)


# ----------------------------------------------------------------------------
# Demo / self-check
# ----------------------------------------------------------------------------
if __name__ == "__main__":
    input_dim = 32
    max_len = 16
    seq, bs = 8, 4
    p = 0.1

    key = jax.random.PRNGKey(0)
    kx, kd = jax.random.split(key)
    x = jax.random.normal(kx, (seq, bs, input_dim), dtype=jnp.float32)

    pe = make_pe_table(input_dim, max_len)

    # Eval-mode forward (dropout is identity) -- check against pure-JAX ref.
    out_eval = positional_encoding(x, pe, dropout_p=p, training=False)
    out_eval = jax.block_until_ready(out_eval)
    y_ref = x + pe[:seq][:, None, :]
    assert out_eval.shape == (seq, bs, input_dim)
    assert jnp.allclose(out_eval, y_ref, atol=1e-6), "eval-mode mismatch"

    # Training-mode forward exercises the in-kernel dropout math.
    out_train = positional_encoding(x, pe, dropout_p=p, training=True,
                                    rng_key=kd)
    out_train = jax.block_until_ready(out_train)
    assert out_train.shape == (seq, bs, input_dim)
    # Structural check: every element is either dropped (0) or (x+pe)/(1-p).
    expected = y_ref / (1.0 - p)
    ok = jnp.all(jnp.isclose(out_train, 0.0)
                 | jnp.isclose(out_train, expected, atol=1e-5))
    assert bool(ok), "training-mode dropout structure mismatch"

    print("KERNEL_OK")
</pallas_src>

<mosaic_0001>
module attributes {stable_mosaic.version = 11 : i64} {
  func.func @_pe_add_kernel(%arg0: i32, %arg1: memref<8x4x32xf32, #tpu.memory_space<vmem>>, %arg2: memref<8x1x32xf32, #tpu.memory_space<vmem>>, %arg3: memref<8x4x32xf32, #tpu.memory_space<vmem>>) attributes {dimension_semantics = [#tpu.dimension_semantics<parallel>], iteration_bounds = array<i64: 1>, scalar_prefetch = 0 : i64, scratch_operands = 0 : i64, tpu.core_type = #tpu.core_type<tc>, window_params = [{transform_indices = @transform_0, window_bounds = array<i64: 8, 4, 32>}, {transform_indices = @transform_1, window_bounds = array<i64: 8, 1, 32>}, {transform_indices = @transform_2, window_bounds = array<i64: 8, 4, 32>}]} {
    %c0 = arith.constant 0 : index
    %c0_0 = arith.constant 0 : index
    %c0_1 = arith.constant 0 : index
    %0 = vector.load %arg1[%c0, %c0_0, %c0_1] : memref<8x4x32xf32, #tpu.memory_space<vmem>>, vector<8x4x32xf32>
    %c0_2 = arith.constant 0 : index
    %c0_3 = arith.constant 0 : index
    %c0_4 = arith.constant 0 : index
    %1 = vector.load %arg2[%c0_2, %c0_3, %c0_4] : memref<8x1x32xf32, #tpu.memory_space<vmem>>, vector<8x1x32xf32>
    %2 = vector.broadcast %1 : vector<8x1x32xf32> to vector<8x4x32xf32>
    %3 = arith.addf %0, %2 : vector<8x4x32xf32>
    %c0_5 = arith.constant 0 : index
    %c0_6 = arith.constant 0 : index
    %c0_7 = arith.constant 0 : index
    %4 = vector.load %arg3[%c0_5, %c0_6, %c0_7] : memref<8x4x32xf32, #tpu.memory_space<vmem>>, vector<8x4x32xf32>
    tpu.vector_store %arg3[%c0_5, %c0_6, %c0_7], %3 {strides = array<i32>} : memref<8x4x32xf32, #tpu.memory_space<vmem>>, vector<8x4x32xf32>,
    return
  }
  func.func @transform_0(%arg0: i32) -> (i32, i32, i32) {
    %c0_i32 = arith.constant 0 : i32
    %c0_i32_0 = arith.constant 0 : i32
    %c0_i32_1 = arith.constant 0 : i32
    return %arg0, %c0_i32, %c0_i32_0 : i32, i32, i32
  }
  func.func @transform_1(%arg0: i32) -> (i32, i32, i32) {
    %c0_i32 = arith.constant 0 : i32
    %c0_i32_0 = arith.constant 0 : i32
    %c0_i32_1 = arith.constant 0 : i32
    return %arg0, %c0_i32, %c0_i32_0 : i32, i32, i32
  }
  func.func @transform_2(%arg0: i32) -> (i32, i32, i32) {
    %c0_i32 = arith.constant 0 : i32
    %c0_i32_0 = arith.constant 0 : i32
    %c0_i32_1 = arith.constant 0 : i32
    return %arg0, %c0_i32, %c0_i32_0 : i32, i32, i32
  }
}

</mosaic_0001>

<bundles_post_ra>
// kernel: tpu_custom_call.1
= control target key start
LH: loop header
LB: loop body
LE: loop exit
PB: predicated region body
PF: predicated region fallthrough
CT: control target
= control target key end

     0   :  { %7 = vsyncpa [#allocation3], 0  ;;  %s304_s0 = inlined_call_operand.hbm [shape: f32[8,4,32], index: 0, kind: input, shape index: {}]   ;;  %s305_s1 = inlined_call_operand.hbm [shape: f32[16,1,32], index: 1, kind: input, shape index: {}]   ;;  %s306_s2 = inlined_call_operand.hbm [shape: f32[8,4,32], index: 2, kind: output, shape index: {}]  }
   0x1   :  { %8 = vsyncpa [#allocation6], 0 }
   0x2   :  { %9 = vsyncpa [#allocation4], 0  ;;  %s226_s9 = smov [#allocation2]   ;;  %s154_s13 = scalar_lea.hbm %s304_s0, 512 }
   0x3   :  { %s15_s10 = sshll.u32 %s226_s9, 4  ;;  %p155_p0 = scmp.ne.s32.totalorder %s304_s0, %s154_s13  ;;  %s16_s10 = int_to_ptr.vmem [resolvable:$true] %s15_s10 }
   0x4   :  { %p158_p1 = scmp.lt.u32.totalorder %s154_s13, %s304_s0 }
   0x6   :  { %p160_p2 = pnand %p158_p1, %p155_p0 }
   0x8   :  { %163 = shalt.err (!%p160_p2)
}
   0x9   :  { %s164_s18 = scalar_lea.vmem %s16_s10, 512  ;;  %p169_p4 = scmp.lt.s32.totalorder %s16_s10, %s16_s10 }
   0xa   :  { %p165_p3 = scmp.ne.s32.totalorder %s16_s10, %s164_s18  ;;  %p170_p5 = scmp.lt.s32.totalorder %s164_s18, %s164_s18 }
   0xc   :  { %p171_p6 = por %p170_p5, %p169_p4 }
   0xe   :  { %p172_p7 = pnand %p171_p6, %p165_p3 }
  0x10   :  { %175 = shalt.err (!%p172_p7)
}
  0x11   :  { %s227_s19 = smov 64   ;;  %s228_s20 = smov 4  }
  0x12   :  { %21 = dma.hbm_to_vmem [thread:$0]  %s304_s0, 512, %s16_s10, [#allocation3], %s227_s19, %s227_s19, %s228_s20  }
  0x13   :  { %s229_s23 = smov [#allocation5]   ;;  %s176_s27 = scalar_lea.hbm %s305_s1, 128 }
  0x14   :  { %s27_s24 = sshll.u32 %s229_s23, 4  ;;  %p177_p8 = scmp.ne.s32.totalorder %s305_s1, %s176_s27  ;;  %s28_s24 = int_to_ptr.vmem [resolvable:$true] %s27_s24 }
  0x15   :  { %s178_s4 = scalar_lea.hbm %s305_s1, 256  ;;  %p180_p10 = scmp.lt.u32.totalorder %s176_s27, %s305_s1 }
  0x16   :  { %p179_p9 = scmp.lt.u32.totalorder %s178_s4, %s176_s27 }
  0x18   :  { %p181_p11 = por %p180_p10, %p179_p9 }
  0x1a   :  { %p182_p12 = pnand %p181_p11, %p177_p8 }
  0x1c   :  { %185 = shalt.err (!%p182_p12)
}
  0x1d   :  { %s186_s0 = scalar_lea.vmem %s28_s24, 128  ;;  %p191_p0 = scmp.lt.s32.totalorder %s28_s24, %s28_s24 }
  0x1e   :  { %p187_p13 = scmp.ne.s32.totalorder %s28_s24, %s186_s0  ;;  %p192_p1 = scmp.lt.s32.totalorder %s186_s0, %s186_s0 }
  0x20   :  { %p193_p2 = por %p192_p1, %p191_p0 }
  0x22   :  { %p194_p3 = pnand %p193_p2, %p187_p13 }
  0x24   :  { %197 = shalt.err (!%p194_p3)
}
  0x25   :  { %s230_s7 = smov 16   ;;  %s231_s8 = smov 1  }
  0x26   :  { %33 = dma.hbm_to_vmem [thread:$0]  %s305_s1, 128, %s28_s24, [#allocation6], %s230_s7, %s230_s7, %s231_s8  }
  0x27   :  { %220 = dma.done.wait [#allocation3], 512  }
  0x28   :  { %221 = vsyncadd [#allocation3], 4294966784 }
  0x29   :  { %222 = dma.done.wait [#allocation6], 128  }
  0x2a   :  { %223 = vsyncadd [#allocation6], 4294967168  ;;  %vm112_vm0 = vcmask 257024   ;;  %s232_s11 = smov [#allocation7]   ;;  %v40_v0 = vld [vmem:[#allocation2] sm:$0xf] }
  0x2b   :  { %s278_s12 = sshll.u32 %s232_s11, 4  ;;  %v139_v1 = vld [vmem:[#allocation5] ss:$0 sm:$0xff]  ;;  %v41_v2 = vld [vmem:[#allocation2 + $0x4] sm:$0xf]  ;;  %s127_s12 = int_to_ptr.vmem [resolvable:$true] %s278_s12 }
  0x2c   :  { %v104_v3 = vadd.f32 %v139_v1, %v40_v0  ;;  %v140_v4 = vld [vmem:[#allocation5 + $0x1] ss:$0 sm:$0xff]  ;;  %v42_v5 = vld [vmem:[#allocation2 + $0x8] sm:$0xf]  ;;  %v141_v6 = vld [vmem:[#allocation5 + $0x2] ss:$0 sm:$0xff]  ;;  %p203_p5 = scmp.lt.s32.totalorder %s127_s12, %s127_s12 }
  0x2d   :  { %v105_v7 = vadd.f32 %v140_v4, %v41_v2  ;;  %v106_v8 = vadd.f32 %v141_v6, %v42_v5  ;;  %v43_v9 = vld [vmem:[#allocation2 + $0xc] sm:$0xf]  ;;  %v142_v10 = vld [vmem:[#allocation5 + $0x3] ss:$0 sm:$0xff]  ;;  %v44_v11 = vld [vmem:[#allocation2 + $0x10] sm:$0xf] }
  0x2e   :  { %113 = vst.msk [vmem:[#allocation7] sm:$0xf] %vm112_vm0, %v104_v3  ;;  %v107_v12 = vadd.f32 %v142_v10, %v43_v9  ;;  %v143_v13 = vld [vmem:[#allocation5 + $0x4] ss:$0 sm:$0xff]  ;;  %v45_v14 = vld [vmem:[#allocation2 + $0x14] sm:$0xf] }
  0x2f   :  { %v144_v15 = vld [vmem:[#allocation5 + $0x5] ss:$0 sm:$0xff]  ;;  %114 = vst.msk [vmem:[#allocation7 + $0x4] sm:$0xf] %vm112_vm0, %v105_v7  ;;  %115 = vst.msk [vmem:[#allocation7 + $0x8] sm:$0xf] %vm112_vm0, %v106_v8  ;;  %v108_v16 = vadd.f32 %v143_v13, %v44_v11 }
  0x30   :  { %v109_v17 = vadd.f32 %v144_v15, %v45_v14  ;;  %v46_v18 = vld [vmem:[#allocation2 + $0x18] sm:$0xf]  ;;  %v145_v19 = vld [vmem:[#allocation5 + $0x6] ss:$0 sm:$0xff]  ;;  %v47_v20 = vld [vmem:[#allocation2 + $0x1c] sm:$0xf] }
  0x31   :  { %116 = vst.msk [vmem:[#allocation7 + $0xc] sm:$0xf] %vm112_vm0, %v107_v12  ;;  %v110_v21 = vadd.f32 %v145_v19, %v46_v18  ;;  %v146_v22 = vld [vmem:[#allocation5 + $0x7] ss:$0 sm:$0xff]  ;;  %117 = vst.msk [vmem:[#allocation7 + $0x10] sm:$0xf] %vm112_vm0, %v108_v16 }
  0x32   :  { %118 = vst.msk [vmem:[#allocation7 + $0x14] sm:$0xf] %vm112_vm0, %v109_v17  ;;  %v111_v23 = vadd.f32 %v146_v22, %v47_v20  ;;  %s198_s1 = scalar_lea.vmem %s127_s12, 512 }
  0x33   :  { %119 = vst.msk [vmem:[#allocation7 + $0x18] sm:$0xf] %vm112_vm0, %v110_v21  ;;  %p199_p4 = scmp.ne.s32.totalorder %s127_s12, %s198_s1  ;;  %p204_p6 = scmp.lt.s32.totalorder %s198_s1, %s198_s1 }
  0x34   :  { %120 = vst.msk [vmem:[#allocation7 + $0x1c] sm:$0xf] %vm112_vm0, %v111_v23 }
  0x35   :  { %p205_p7 = por %p204_p6, %p203_p5 }
  0x37   :  { %p206_p8 = pnand %p205_p7, %p199_p4 }
  0x39   :  { %209 = shalt.err (!%p206_p8)
}
  0x3a   :  { %s210_s15 = scalar_lea.hbm %s306_s2, 512 }
  0x3b   :  { %p211_p9 = scmp.ne.s32.totalorder %s306_s2, %s210_s15  ;;  %p214_p10 = scmp.lt.u32.totalorder %s210_s15, %s306_s2 }
  0x3d   :  { %p216_p11 = pnand %p214_p10, %p211_p9 }
  0x3f   :  { %219 = shalt.err (!%p216_p11)
}
  0x40   :  { %132 = dma.vmem_to_hbm [thread:$0]  %s127_s12, 512, %s306_s2, [#allocation4], %s227_s19, %s227_s19, %s228_s20  }
  0x41   :  { %224 = dma.done.wait [#allocation4], 512  }
  0x42   :  { %225 = vsyncadd [#allocation4], 4294966784 }
  0x43   :  { %136 = vsyncpa [#allocation3], 1 }
  0x44   :  { %137 = vsyncpa [#allocation6], 1 }
  0x45   :  { %138 = vsyncpa [#allocation4], 1 }

</bundles_post_ra>
